<compile_context>
chip_gen: v7x
topology: tpu7x:2x2x1
jax: 0.10.0
libtpu: 0.0.40
codegen_flags: <defaults>
</compile_context>

<pallas_src>
import functools

import jax
import jax.numpy as jnp
from jax.experimental import pallas as pl
from jax.experimental.pallas import tpu as pltpu


def _round_up(n, m):
    return ((n + m - 1) // m) * m


def _mlp_kernel(x_ref, p_ref, o_ref, *, d_in_padded, num_layers, num_classes):
    """x_ref: (TB, d_in_padded); p_ref: packed params; o_ref: (TB, num_classes)."""
    w_dtype = p_ref.dtype
    bias_base = 128 * num_layers

    def layer(h, i, k_rows, relu):
        # Weight block i, zero-padded to (128, 128); slice only the rows we need.
        w = p_ref[128 * i: 128 * i + k_rows, :]
        # Bias row for layer i (sublane-aligned start), (1, 128), zero-padded lanes.
        b = p_ref[bias_base + 8 * i: bias_base + 8 * i + 1, :]
        y = jnp.dot(h, w, preferred_element_type=jnp.float32) + b.astype(jnp.float32)
        return jnp.maximum(y, 0.0) if relu else y

    h = layer(x_ref[...].astype(w_dtype), 0, d_in_padded, relu=True)
    for i in range(1, num_layers - 1):
        h = layer(h.astype(w_dtype), i, 128, relu=True)
    y = layer(h.astype(w_dtype), num_layers - 1, 128, relu=False)
    o_ref[...] = y[:, :num_classes].astype(o_ref.dtype)


def pack_params(params, param_dtype=jnp.float32):
    """Pack layer params into one (L*128 + L*8, 128) slab.

    Rows [128*i, 128*(i+1)) : weight of layer i, zero-padded to (128, 128).
    Row  128*L + 8*i        : bias of layer i, zero-padded to 128 lanes (the
                              7 rows after it are zero padding so every
                              in-kernel row read is sublane-aligned).
    Zero padding contributes exact zeros to the matmuls, so results match the
    unpadded reference.
    """
    wblocks, bblocks = [], []
    for w, b in params:
        d_in, d_out = w.shape
        assert d_in <= 128 and d_out <= 128, "layer dims must fit one 128-lane block"
        wblocks.append(jnp.zeros((128, 128), jnp.float32)
                       .at[:d_in, :d_out].set(w.astype(jnp.float32)))
        bblocks.append(jnp.zeros((8, 128), jnp.float32)
                       .at[0, :d_out].set(b.reshape(-1).astype(jnp.float32)))
    return jnp.concatenate(wblocks + bblocks, axis=0).astype(param_dtype)


def failure_predictor_forward(x, params, *, param_dtype=jnp.float32,
                              block_batch=None):
    """x: (B, input_size). params: list of (W:(in,out), b:(1,out)). Returns (B, num_classes) f32."""
    B, input_size = x.shape
    num_layers = len(params)
    num_classes = params[-1][0].shape[1]
    assert params[0][0].shape[0] == input_size
    assert input_size <= 128, "TODO(synk): tile the input feature dim if input_size > 128"

    # bf16 packs 16 rows per sublane tile; f32 packs 8.
    sub = 8 if jnp.dtype(param_dtype).itemsize >= 4 else 16

    # Stream x in the storage dtype; pad feature dim to a sublane multiple
    # (padded columns hit zero weight rows -> exact no-op).
    d0p = _round_up(input_size, 8)
    x = x.astype(param_dtype)
    if d0p != input_size:
        x = jnp.pad(x, ((0, 0), (0, d0p - input_size)))

    # Batch tiling: big tiles for throughput at large B, rounded tiny tiles otherwise.
    if block_batch is None:
        block_batch = 512 if B >= 512 else max(B, 1)
    tb = _round_up(block_batch, sub)
    b_pad = _round_up(B, tb)
    if b_pad != B:
        x = jnp.pad(x, ((0, b_pad - B), (0, 0)))

    slab = pack_params(params, param_dtype)

    kernel = functools.partial(_mlp_kernel, d_in_padded=d0p,
                               num_layers=num_layers, num_classes=num_classes)
    out = pl.pallas_call(
        kernel,
        out_shape=jax.ShapeDtypeStruct((b_pad, num_classes), jnp.float32),
        grid=(b_pad // tb,),
        in_specs=[
            pl.BlockSpec((tb, d0p), lambda i: (i, 0)),      # streamed activations
            pl.BlockSpec(slab.shape, lambda i: (0, 0)),     # VMEM-resident packed params
        ],
        out_specs=pl.BlockSpec((tb, num_classes), lambda i: (i, 0)),
        compiler_params=pltpu.CompilerParams(
            dimension_semantics=("parallel",)),             # v7x: split batch over 2 TCs
    )(x, slab)
    return out[:B]


def init_params(key, input_size, num_classes):
    """Deterministic init matching the PyTorch layer shapes.
    Weights stored as (in_features, out_features) so the kernel does x @ W."""
    dims = [input_size, 64, 32, 16, 8, 4, num_classes]
    params = []
    for i in range(len(dims) - 1):
        key, kw, kb = jax.random.split(key, 3)
        fan_in, fan_out = dims[i], dims[i + 1]
        bound = 1.0 / jnp.sqrt(jnp.float32(fan_in))
        w = jax.random.uniform(kw, (fan_in, fan_out), jnp.float32, -bound, bound)
        b = jax.random.uniform(kb, (1, fan_out), jnp.float32, -bound, bound)
        params.append((w, b))
    return params


def reference_forward(x, params):
    h = x
    for i, (w, b) in enumerate(params):
        h = h @ w + b
        if i < len(params) - 1:
            h = jnp.maximum(h, 0.0)
    return h


if __name__ == "__main__":
    key = jax.random.PRNGKey(0)
    batch = 8
    input_size = 32
    num_classes = 4

    k_x, k_p = jax.random.split(key)
    x = jax.random.normal(k_x, (batch, input_size), jnp.float32)
    params = init_params(k_p, input_size, num_classes)
    ref = reference_forward(x, params)

    # f32 path, single grid step.
    out = jax.block_until_ready(failure_predictor_forward(x, params))
    assert out.shape == (batch, num_classes)
    assert jnp.allclose(out, ref, atol=1e-5, rtol=1e-5)

    # Multi-step grid + batch-padding path (f32), still small/fast.
    k_x2, _ = jax.random.split(k_x)
    x2 = jax.random.normal(k_x2, (200, input_size), jnp.float32)
    out2 = jax.block_until_ready(
        failure_predictor_forward(x2, params, block_batch=64))
    assert out2.shape == (200, num_classes)
    assert jnp.allclose(out2, reference_forward(x2, params), atol=1e-5, rtol=1e-5)

    # bf16 storage / f32 accumulation path (v6e/v7x bandwidth optimization).
    out_bf16 = jax.block_until_ready(
        failure_predictor_forward(x, params, param_dtype=jnp.bfloat16))
    assert out_bf16.shape == (batch, num_classes)
    assert jnp.allclose(out_bf16, ref, atol=1e-1, rtol=1e-1)

    print("KERNEL_OK")
</pallas_src>

<mosaic_0001>
module attributes {stable_mosaic.version = 11 : i64} {
  func.func @_mlp_kernel(%arg0: i32, %arg1: memref<8x32xf32, #tpu.memory_space<vmem>>, %arg2: memref<816x128xf32, #tpu.memory_space<vmem>>, %arg3: memref<8x4xf32, #tpu.memory_space<vmem>>) attributes {dimension_semantics = [#tpu.dimension_semantics<parallel>], iteration_bounds = array<i64: 1>, scalar_prefetch = 0 : i64, scratch_operands = 0 : i64, tpu.core_type = #tpu.core_type<tc>, window_params = [{transform_indices = @transform_0, window_bounds = array<i64: 8, 32>}, {pipeline_mode = #tpu.pipeline_mode<synchronous>, transform_indices = @transform_1, window_bounds = array<i64: 816, 128>}, {transform_indices = @transform_2, window_bounds = array<i64: 8, 4>}]} {
    %c0 = arith.constant 0 : index
    %c0_0 = arith.constant 0 : index
    %0 = vector.load %arg1[%c0, %c0_0] : memref<8x32xf32, #tpu.memory_space<vmem>>, vector<8x32xf32>
    %c0_1 = arith.constant 0 : index
    %c0_2 = arith.constant 0 : index
    %1 = vector.load %arg2[%c0_1, %c0_2] : memref<816x128xf32, #tpu.memory_space<vmem>>, vector<32x128xf32>
    %c768 = arith.constant 768 : index
    %c0_3 = arith.constant 0 : index
    %2 = vector.load %arg2[%c768, %c0_3] : memref<816x128xf32, #tpu.memory_space<vmem>>, vector<1x128xf32>
    %cst = arith.constant dense<0.000000e+00> : vector<8x128xf32>
    %3 = tpu.matmul %0, %1, %cst {dimension_numbers = #tpu.dot_dimension_numbers<[1], [0], [0], [1], [0, 0, 1, 1], [], []>} : vector<8x32xf32>, vector<32x128xf32>, vector<8x128xf32> -> vector<8x128xf32>
    %4 = vector.broadcast %2 : vector<1x128xf32> to vector<8x128xf32>
    %5 = arith.addf %3, %4 : vector<8x128xf32>
    %cst_4 = arith.constant 0.000000e+00 : f32
    %6 = vector.broadcast %cst_4 : f32 to vector<8x128xf32>
    %7 = arith.maximumf %5, %6 : vector<8x128xf32>
    %c128 = arith.constant 128 : index
    %c0_5 = arith.constant 0 : index
    %8 = vector.load %arg2[%c128, %c0_5] : memref<816x128xf32, #tpu.memory_space<vmem>>, vector<128x128xf32>
    %c776 = arith.constant 776 : index
    %c0_6 = arith.constant 0 : index
    %9 = vector.load %arg2[%c776, %c0_6] : memref<816x128xf32, #tpu.memory_space<vmem>>, vector<1x128xf32>
    %cst_7 = arith.constant dense<0.000000e+00> : vector<8x128xf32>
    %10 = tpu.matmul %7, %8, %cst_7 {dimension_numbers = #tpu.dot_dimension_numbers<[1], [0], [0], [1], [0, 0, 1, 1], [], []>} : vector<8x128xf32>, vector<128x128xf32>, vector<8x128xf32> -> vector<8x128xf32>
    %11 = vector.broadcast %9 : vector<1x128xf32> to vector<8x128xf32>
    %12 = arith.addf %10, %11 : vector<8x128xf32>
    %cst_8 = arith.constant 0.000000e+00 : f32
    %13 = vector.broadcast %cst_8 : f32 to vector<8x128xf32>
    %14 = arith.maximumf %12, %13 : vector<8x128xf32>
    %c256 = arith.constant 256 : index
    %c0_9 = arith.constant 0 : index
    %15 = vector.load %arg2[%c256, %c0_9] : memref<816x128xf32, #tpu.memory_space<vmem>>, vector<128x128xf32>
    %c784 = arith.constant 784 : index
    %c0_10 = arith.constant 0 : index
    %16 = vector.load %arg2[%c784, %c0_10] : memref<816x128xf32, #tpu.memory_space<vmem>>, vector<1x128xf32>
    %cst_11 = arith.constant dense<0.000000e+00> : vector<8x128xf32>
    %17 = tpu.matmul %14, %15, %cst_11 {dimension_numbers = #tpu.dot_dimension_numbers<[1], [0], [0], [1], [0, 0, 1, 1], [], []>} : vector<8x128xf32>, vector<128x128xf32>, vector<8x128xf32> -> vector<8x128xf32>
    %18 = vector.broadcast %16 : vector<1x128xf32> to vector<8x128xf32>
    %19 = arith.addf %17, %18 : vector<8x128xf32>
    %cst_12 = arith.constant 0.000000e+00 : f32
    %20 = vector.broadcast %cst_12 : f32 to vector<8x128xf32>
    %21 = arith.maximumf %19, %20 : vector<8x128xf32>
    %c384 = arith.constant 384 : index
    %c0_13 = arith.constant 0 : index
    %22 = vector.load %arg2[%c384, %c0_13] : memref<816x128xf32, #tpu.memory_space<vmem>>, vector<128x128xf32>
    %c792 = arith.constant 792 : index
    %c0_14 = arith.constant 0 : index
    %23 = vector.load %arg2[%c792, %c0_14] : memref<816x128xf32, #tpu.memory_space<vmem>>, vector<1x128xf32>
    %cst_15 = arith.constant dense<0.000000e+00> : vector<8x128xf32>
    %24 = tpu.matmul %21, %22, %cst_15 {dimension_numbers = #tpu.dot_dimension_numbers<[1], [0], [0], [1], [0, 0, 1, 1], [], []>} : vector<8x128xf32>, vector<128x128xf32>, vector<8x128xf32> -> vector<8x128xf32>
    %25 = vector.broadcast %23 : vector<1x128xf32> to vector<8x128xf32>
    %26 = arith.addf %24, %25 : vector<8x128xf32>
    %cst_16 = arith.constant 0.000000e+00 : f32
    %27 = vector.broadcast %cst_16 : f32 to vector<8x128xf32>
    %28 = arith.maximumf %26, %27 : vector<8x128xf32>
    %c512 = arith.constant 512 : index
    %c0_17 = arith.constant 0 : index
    %29 = vector.load %arg2[%c512, %c0_17] : memref<816x128xf32, #tpu.memory_space<vmem>>, vector<128x128xf32>
    %c800 = arith.constant 800 : index
    %c0_18 = arith.constant 0 : index
    %30 = vector.load %arg2[%c800, %c0_18] : memref<816x128xf32, #tpu.memory_space<vmem>>, vector<1x128xf32>
    %cst_19 = arith.constant dense<0.000000e+00> : vector<8x128xf32>
    %31 = tpu.matmul %28, %29, %cst_19 {dimension_numbers = #tpu.dot_dimension_numbers<[1], [0], [0], [1], [0, 0, 1, 1], [], []>} : vector<8x128xf32>, vector<128x128xf32>, vector<8x128xf32> -> vector<8x128xf32>
    %32 = vector.broadcast %30 : vector<1x128xf32> to vector<8x128xf32>
    %33 = arith.addf %31, %32 : vector<8x128xf32>
    %cst_20 = arith.constant 0.000000e+00 : f32
    %34 = vector.broadcast %cst_20 : f32 to vector<8x128xf32>
    %35 = arith.maximumf %33, %34 : vector<8x128xf32>
    %c640 = arith.constant 640 : index
    %c0_21 = arith.constant 0 : index
    %36 = vector.load %arg2[%c640, %c0_21] : memref<816x128xf32, #tpu.memory_space<vmem>>, vector<128x128xf32>
    %c808 = arith.constant 808 : index
    %c0_22 = arith.constant 0 : index
    %37 = vector.load %arg2[%c808, %c0_22] : memref<816x128xf32, #tpu.memory_space<vmem>>, vector<1x128xf32>
    %cst_23 = arith.constant dense<0.000000e+00> : vector<8x128xf32>
    %38 = tpu.matmul %35, %36, %cst_23 {dimension_numbers = #tpu.dot_dimension_numbers<[1], [0], [0], [1], [0, 0, 1, 1], [], []>} : vector<8x128xf32>, vector<128x128xf32>, vector<8x128xf32> -> vector<8x128xf32>
    %39 = vector.broadcast %37 : vector<1x128xf32> to vector<8x128xf32>
    %40 = arith.addf %38, %39 : vector<8x128xf32>
    %41 = vector.extract_strided_slice %40 {offsets = [0, 0], sizes = [8, 4], strides = [1, 1]} : vector<8x128xf32> to vector<8x4xf32>
    %c0_24 = arith.constant 0 : index
    %c0_25 = arith.constant 0 : index
    %42 = vector.load %arg3[%c0_24, %c0_25] : memref<8x4xf32, #tpu.memory_space<vmem>>, vector<8x4xf32>
    tpu.vector_store %arg3[%c0_24, %c0_25], %41 {strides = array<i32>} : memref<8x4xf32, #tpu.memory_space<vmem>>, vector<8x4xf32>,
    return
  }
  func.func @transform_0(%arg0: i32) -> (i32, i32) {
    %c0_i32 = arith.constant 0 : i32
    %c0_i32_0 = arith.constant 0 : i32
    return %arg0, %c0_i32 : i32, i32
  }
  func.func @transform_1(%arg0: i32) -> (i32, i32) {
    %c0_i32 = arith.constant 0 : i32
    %c0_i32_0 = arith.constant 0 : i32
    %c0_i32_1 = arith.constant 0 : i32
    return %c0_i32, %c0_i32_0 : i32, i32
  }
  func.func @transform_2(%arg0: i32) -> (i32, i32) {
    %c0_i32 = arith.constant 0 : i32
    %c0_i32_0 = arith.constant 0 : i32
    return %arg0, %c0_i32 : i32, i32
  }
}

</mosaic_0001>

<bundles_post_ra>
// kernel: tpu_custom_call.1
= control target key start
LH: loop header
LB: loop body
LE: loop exit
PB: predicated region body
PF: predicated region fallthrough
CT: control target
= control target key end

     0   :  { %7 = vsyncpa [#allocation3], 0  ;;  %s1163_s0 = inlined_call_operand.hbm [shape: f32[8,32], index: 0, kind: input, shape index: {}]   ;;  %s1164_s1 = inlined_call_operand.hbm [shape: f32[816,128], index: 1, kind: input, shape index: {}]   ;;  %s1165_s2 = inlined_call_operand.vmem [shape: f32[8,4], index: 2, kind: output, shape index: {}]  }
   0x1   :  { %8 = vsyncpa [#allocation5], 0  ;;  %s1053_s9 = smov [#allocation2]   ;;  %s1054_s11 = smov [#allocation4]  }
   0x2   :  { %s15_s10 = sshll.u32 %s1053_s9, 4  ;;  %s24_s12 = sshll.u32 %s1054_s11, 4  ;;  %s16_s10 = int_to_ptr.vmem [resolvable:$true] %s15_s10  ;;  %s1075_s12 = int_to_ptr.vmem [resolvable:$true] %s24_s12 }
   0x3   :  { %s1005_s15 = scalar_lea.hbm %s1163_s0, 128 }
   0x4   :  { %p1006_p0 = scmp.ne.s32.totalorder %s1163_s0, %s1005_s15  ;;  %p1009_p1 = scmp.lt.u32.totalorder %s1005_s15, %s1163_s0 }
   0x6   :  { %p1011_p2 = pnand %p1009_p1, %p1006_p0 }
   0x8   :  { %1014 = shalt.err (!%p1011_p2)
}
   0x9   :  { %s1015_s20 = scalar_lea.vmem %s16_s10, 128  ;;  %p1020_p4 = scmp.lt.s32.totalorder %s16_s10, %s16_s10 }
   0xa   :  { %p1016_p3 = scmp.ne.s32.totalorder %s16_s10, %s1015_s20  ;;  %p1021_p5 = scmp.lt.s32.totalorder %s1015_s20, %s1015_s20 }
   0xc   :  { %p1022_p6 = por %p1021_p5, %p1020_p4 }
   0xe   :  { %p1023_p7 = pnand %p1022_p6, %p1016_p3 }
  0x10   :  { %1026 = shalt.err (!%p1023_p7)
}
  0x11   :  { %18 = dma.hbm_to_vmem [thread:$0]  %s1163_s0, 128, %s16_s10, [#allocation3]  }
  0x12   :  { %s1027_s25 = scalar_lea.hbm %s1164_s1, 13056 }
  0x13   :  { %p1028_p8 = scmp.ne.s32.totalorder %s1164_s1, %s1027_s25  ;;  %p1031_p9 = scmp.lt.u32.totalorder %s1027_s25, %s1164_s1 }
  0x15   :  { %p1033_p10 = pnand %p1031_p9, %p1028_p8 }
  0x17   :  { %1036 = shalt.err (!%p1033_p10)
}
  0x18   :  { %s1037_s30 = scalar_lea.vmem %s1075_s12, 13056  ;;  %p1042_p12 = scmp.lt.s32.totalorder %s1075_s12, %s1075_s12 }
  0x19   :  { %p1038_p11 = scmp.ne.s32.totalorder %s1075_s12, %s1037_s30  ;;  %p1043_p13 = scmp.lt.s32.totalorder %s1037_s30, %s1037_s30 }
  0x1b   :  { %p1044_p0 = por %p1043_p13, %p1042_p12 }
  0x1d   :  { %p1045_p1 = pnand %p1044_p0, %p1038_p11 }
  0x1f   :  { %1048 = shalt.err (!%p1045_p1)
}
  0x20   :  { %s1055_s0 = smov 128   ;;  %s1056_s3 = smov 8  }
  0x21   :  { %30 = dma.hbm_to_vmem [thread:$0]  %s1164_s1, 13056, %s1075_s12, [#allocation5], %s1055_s0, %s1055_s0, %s1056_s3  }
  0x22   :  { %1049 = dma.done.wait [#allocation3], 128  }
  0x23   :  { %1050 = vsyncadd [#allocation3], 4294967168 }
  0x24   :  { %1051 = dma.done.wait [#allocation5], 13056  }
  0x25   :  { %1052 = vsyncadd [#allocation5], 4294954240  ;;  %v1057_v0 = vmov 0.0|0.0   ;;  %vm1058_vm0 = vmmov 0   ;;  %v1059_v1 = vmov 0.0   ;;  %v38_v2 = vld [vmem:[#allocation4] sm:$0xff] }
  0x26   :  { %872 = vmatprep.subr.bf16.mxu0 %v1057_v0  ;;  %694 = vmatprep.mubr.msk.f32.mxu0 %vm1058_vm0, %v1059_v1  ;;  %v39_v3 = vld [vmem:[#allocation4 + $0x8] sm:$0xff]  ;;  %v40_v4 = vld [vmem:[#allocation4 + $0x10] sm:$0xff]  ;;  %v41_v6 = vld [vmem:[#allocation4 + $0x18] sm:$0xff]  ;;  %vm47_vm1 = vcmask 261120   ;;  %vm581_vm2 = vcmask 31744  }
  0x27   :  { %878 = vmatprep.subr.bf16.mxu1 %v1057_v0  ;;  %729 = vmatprep.mubr.msk.f32.mxu1 %vm1058_vm0, %v1059_v1  ;;  %v873_v5 = vpack.c.bf16 %v39_v3, %v38_v2  ;;  %v122_v7 = vld [vmem:[#allocation4 + $0x80] sm:$0xff]  ;;  %v123_v8 = vld [vmem:[#allocation4 + $0x88] sm:$0xff]  ;;  %v124_v9 = vld [vmem:[#allocation4 + $0x90] sm:$0xff]  ;;  %v876_v11 = vpack.c.bf16 %v41_v6, %v40_v4 }
  0x28   :  { %v125_v10 = vld [vmem:[#allocation4 + $0x98] sm:$0xff]  ;;  %v879_v12 = vpack.c.bf16 %v123_v8, %v122_v7  ;;  %v126_v14 = vld [vmem:[#allocation4 + $0xa0] sm:$0xff]  ;;  %v127_v15 = vld [vmem:[#allocation4 + $0xa8] sm:$0xff] }
  0x29   :  { %874 = vmatpush3.bf16.msra.mxu0 %v873_v5  ;;  %v882_v13 = vpack.c.bf16 %v125_v10, %v124_v9  ;;  %v37_v16 = vld [vmem:[#allocation2] sm:$0xff]  ;;  %v885_v17 = vpack.c.bf16 %v127_v15, %v126_v14  ;;  %v128_v18 = vld [vmem:[#allocation4 + $0xb0] sm:$0xff]  ;;  %v130_v21 = vld [vmem:[#allocation4 + $0xc0] sm:$0xff] }
  0x2a   :  { %875 = vmatprep.subr.bf16.mxu0 %v1057_v0  ;;  %880 = vmatpush3.bf16.msra.mxu1 %v879_v12  ;;  %v129_v19 = vld [vmem:[#allocation4 + $0xb8] sm:$0xff]  ;;  %v131_v22 = vld [vmem:[#allocation4 + $0xc8] sm:$0xff]  ;;  %v132_v24 = vld [vmem:[#allocation4 + $0xd0] sm:$0xff] }
  0x2b   :  { %881 = vmatprep.subr.bf16.mxu1 %v1057_v0  ;;  %v888_v20 = vpack.c.bf16 %v129_v19, %v128_v18  ;;  %v891_v23 = vpack.c.bf16 %v131_v22, %v130_v21  ;;  %v133_v25 = vld [vmem:[#allocation4 + $0xd8] sm:$0xff]  ;;  %v134_v27 = vld [vmem:[#allocation4 + $0xe0] sm:$0xff]  ;;  %v135_v28 = vld [vmem:[#allocation4 + $0xe8] sm:$0xff] }
  0x2c   :  { %v894_v26 = vpack.c.bf16 %v133_v25, %v132_v24  ;;  %v897_v29 = vpack.c.bf16 %v135_v28, %v134_v27  ;;  %v136_v30 = vld [vmem:[#allocation4 + $0xf0] sm:$0xff]  ;;  %v137_v31 = vld [vmem:[#allocation4 + $0xf8] sm:$0xff]  ;;  %v214_v33 = vld [vmem:[#allocation4 + $0x100] sm:$0xff] }
  0x2d   :  { %877 = vmatpush3.bf16.msra.mxu0 %v876_v11  ;;  %v900_v32 = vpack.c.bf16 %v137_v31, %v136_v30  ;;  %v215_v34 = vld [vmem:[#allocation4 + $0x108] sm:$0xff]  ;;  %v216_v35 = vld [vmem:[#allocation4 + $0x110] sm:$0xff]  ;;  %v217_v37 = vld [vmem:[#allocation4 + $0x118] sm:$0xff] }
  0x2e   :  { %902 = vmatprep.subr.bf16.mxu0 %v1057_v0  ;;  %883 = vmatpush3.bf16.msra.mxu1 %v882_v13  ;;  %v903_v36 = vpack.c.bf16 %v215_v34, %v214_v33  ;;  %v906_v38 = vpack.c.bf16 %v217_v37, %v216_v35  ;;  %v218_v39 = vld [vmem:[#allocation4 + $0x120] sm:$0xff]  ;;  %v219_v40 = vld [vmem:[#allocation4 + $0x128] sm:$0xff]  ;;  %v220_v42 = vld [vmem:[#allocation4 + $0x130] sm:$0xff] }
  0x2f   :  { %884 = vmatprep.subr.bf16.mxu1 %v1057_v0  ;;  %v909_v41 = vpack.c.bf16 %v219_v40, %v218_v39  ;;  %v221_v43 = vld [vmem:[#allocation4 + $0x138] sm:$0xff]  ;;  %v222_v45 = vld [vmem:[#allocation4 + $0x140] sm:$0xff]  ;;  %v223_v46 = vld [vmem:[#allocation4 + $0x148] sm:$0xff] }
  0x30   :  { %695 = vmatmul.mubr.msk.f32.vlgmr.msra.gmra.mrb[0].mxu0 %vm47_vm1, %v37_v16  ;;  %v912_v44 = vpack.c.bf16 %v221_v43, %v220_v42  ;;  %v915_v47 = vpack.c.bf16 %v223_v46, %v222_v45  ;;  %v224_v48 = vld [vmem:[#allocation4 + $0x150] sm:$0xff]  ;;  %v225_v49 = vld [vmem:[#allocation4 + $0x158] sm:$0xff]  ;;  %v226_v51 = vld [vmem:[#allocation4 + $0x160] sm:$0xff] }
  0x31   :  { %764 = vmatprep.mubr.msk.f32.mxu0 %vm1058_vm0, %v1059_v1  ;;  %904 = vmatpush3.bf16.msra.mxu0 %v903_v36  ;;  %v918_v50 = vpack.c.bf16 %v225_v49, %v224_v48  ;;  %v227_v52 = vld [vmem:[#allocation4 + $0x168] sm:$0xff]  ;;  %v589_v54 = vld [vmem:[#allocation4 + $0x300] ss:$0 sm:$0xff]  ;;  %v228_v59 = vld [vmem:[#allocation4 + $0x170] sm:$0xff] }
  0x32   :  { %886 = vmatpush3.bf16.msra.mxu1 %v885_v17  ;;  %905 = vmatprep.subr.bf16.mxu0 %v1057_v0  ;;  %v921_v53 = vpack.c.bf16 %v227_v52, %v226_v51  ;;  %v229_v60 = vld [vmem:[#allocation4 + $0x178] sm:$0xff]  ;;  %v306_v62 = vld [vmem:[#allocation4 + $0x180] sm:$0xff]  ;;  %v307_v63 = vld [vmem:[#allocation4 + $0x188] sm:$0xff] }
  0x33   :  { %887 = vmatprep.subr.bf16.mxu1 %v1057_v0  ;;  %v924_v61 = vpack.c.bf16 %v229_v60, %v228_v59  ;;  %v308_v2 = vld [vmem:[#allocation4 + $0x190] sm:$0xff]  ;;  %v927_v3 = vpack.c.bf16 %v307_v63, %v306_v62  ;;  %v309_v4 = vld [vmem:[#allocation4 + $0x198] sm:$0xff]  ;;  %v310_v6 = vld [vmem:[#allocation4 + $0x1a0] sm:$0xff] }
  0x34   :  { %v930_v5 = vpack.c.bf16 %v309_v4, %v308_v2  ;;  %v311_v7 = vld [vmem:[#allocation4 + $0x1a8] sm:$0xff]  ;;  %v312_v9 = vld [vmem:[#allocation4 + $0x1b0] sm:$0xff]  ;;  %v313_v10 = vld [vmem:[#allocation4 + $0x1b8] sm:$0xff] }
  0x35   :  { %907 = vmatpush3.bf16.msra.mxu0 %v906_v38  ;;  %v933_v8 = vpack.c.bf16 %v311_v7, %v310_v6  ;;  %v936_v11 = vpack.c.bf16 %v313_v10, %v312_v9  ;;  %v314_v12 = vld [vmem:[#allocation4 + $0x1c0] sm:$0xff]  ;;  %v315_v13 = vld [vmem:[#allocation4 + $0x1c8] sm:$0xff]  ;;  %v316_v15 = vld [vmem:[#allocation4 + $0x1d0] sm:$0xff] }
  0x36   :  { %889 = vmatpush3.bf16.msra.mxu1 %v888_v20  ;;  %908 = vmatprep.subr.bf16.mxu0 %v1057_v0  ;;  %v939_v14 = vpack.c.bf16 %v315_v13, %v314_v12  ;;  %v317_v16 = vld [vmem:[#allocation4 + $0x1d8] sm:$0xff]  ;;  %v318_v18 = vld [vmem:[#allocation4 + $0x1e0] sm:$0xff]  ;;  %v319_v19 = vld [vmem:[#allocation4 + $0x1e8] sm:$0xff] }
  0x37   :  { %890 = vmatprep.subr.bf16.mxu1 %v1057_v0  ;;  %v942_v17 = vpack.c.bf16 %v317_v16, %v316_v15  ;;  %v945_v20 = vpack.c.bf16 %v319_v19, %v318_v18  ;;  %v591_v21 = vld [vmem:[#allocation4 + $0x308] ss:$0 sm:$0xff]  ;;  %v321_v27 = vld [vmem:[#allocation4 + $0x1f8] sm:$0xff]  ;;  %v400_v31 = vld [vmem:[#allocation4 + $0x210] sm:$0xff] }
  0x38   :  { %v399_v30 = vld [vmem:[#allocation4 + $0x208] sm:$0xff]  ;;  %v401_v33 = vld [vmem:[#allocation4 + $0x218] sm:$0xff]  ;;  %v402_v35 = vld [vmem:[#allocation4 + $0x220] sm:$0xff] }
  0x39   :  { %910 = vmatpush3.bf16.msra.mxu0 %v909_v41  ;;  %v954_v34 = vpack.c.bf16 %v401_v33, %v400_v31  ;;  %v403_v36 = vld [vmem:[#allocation4 + $0x228] sm:$0xff]  ;;  %v404_v38 = vld [vmem:[#allocation4 + $0x230] sm:$0xff]  ;;  %v405_v39 = vld [vmem:[#allocation4 + $0x238] sm:$0xff] }
  0x3a   :  { %892 = vmatpush3.bf16.msra.mxu1 %v891_v23  ;;  %911 = vmatprep.subr.bf16.mxu0 %v1057_v0  ;;  %v957_v37 = vpack.c.bf16 %v403_v36, %v402_v35  ;;  %v960_v40 = vpack.c.bf16 %v405_v39, %v404_v38  ;;  %v406_v41 = vld [vmem:[#allocation4 + $0x240] sm:$0xff]  ;;  %v407_v42 = vld [vmem:[#allocation4 + $0x248] sm:$0xff]  ;;  %v409_v45 = vld [vmem:[#allocation4 + $0x258] sm:$0xff] }
  0x3b   :  { %893 = vmatprep.subr.bf16.mxu1 %v1057_v0  ;;  %v963_v43 = vpack.c.bf16 %v407_v42, %v406_v41  ;;  %v411_v48 = vld [vmem:[#allocation4 + $0x268] sm:$0xff]  ;;  %v492_v60 = vld [vmem:[#allocation4 + $0x290] sm:$0xff]  ;;  %v493_v62 = vld [vmem:[#allocation4 + $0x298] sm:$0xff] }
  0x3c   :  { %v491_v59 = vld [vmem:[#allocation4 + $0x288] sm:$0xff]  ;;  %v978_v63 = vpack.c.bf16 %v493_v62, %v492_v60  ;;  %v494_v2 = vld [vmem:[#allocation4 + $0x2a0] sm:$0xff]  ;;  %v500_v10 = vld [vmem:[#allocation4 + $0x2d0] sm:$0xff] }
  0x3d   :  { %913 = vmatpush3.bf16.msra.mxu0 %v912_v44  ;;  %v408_v44 = vld [vmem:[#allocation4 + $0x250] sm:$0xff]  ;;  %v498_v7 = vld [vmem:[#allocation4 + $0x2c0] sm:$0xff]  ;;  %v593_v16 = vld [vmem:[#allocation4 + $0x318] ss:$0 sm:$0xff] }
  0x3e   :  { %895 = vmatpush3.bf16.msra.mxu1 %v894_v26  ;;  %914 = vmatprep.subr.bf16.mxu0 %v1057_v0  ;;  %v320_v26 = vld [vmem:[#allocation4 + $0x1f0] sm:$0xff]  ;;  %v966_v46 = vpack.c.bf16 %v409_v45, %v408_v44  ;;  %v502_v13 = vld [vmem:[#allocation4 + $0x2e0] sm:$0xff] }
  0x3f   :  { %896 = vmatprep.subr.bf16.mxu1 %v1057_v0  ;;  %v948_v28 = vpack.c.bf16 %v321_v27, %v320_v26 }
  0x41   :  { %916 = vmatpush3.bf16.msra.mxu0 %v915_v47  ;;  %v410_v47 = vld [vmem:[#allocation4 + $0x260] sm:$0xff] }
  0x42   :  { %898 = vmatpush3.bf16.msra.mxu1 %v897_v29  ;;  %917 = vmatprep.subr.bf16.mxu0 %v1057_v0  ;;  %v398_v29 = vld [vmem:[#allocation4 + $0x200] sm:$0xff]  ;;  %v969_v49 = vpack.c.bf16 %v411_v48, %v410_v47 }
  0x43   :  { %899 = vmatprep.subr.bf16.mxu1 %v1057_v0 }
  0x45   :  { %919 = vmatpush3.bf16.msra.mxu0 %v918_v50  ;;  %v592_v50 = vld [vmem:[#allocation4 + $0x310] ss:$0 sm:$0xff] }
  0x46   :  { %901 = vmatpush3.bf16.msra.mxu1 %v900_v32  ;;  %920 = vmatprep.subr.bf16.mxu0 %v1057_v0  ;;  %v951_v32 = vpack.c.bf16 %v399_v30, %v398_v29  ;;  %v595_v29 = vld [vmem:[#allocation4 + $0x328] ss:$0 sm:$0xff] }
  0x47   :  { %926 = vmatprep.subr.bf16.mxu1 %v1057_v0 }
  0x49   :  { %922 = vmatpush3.bf16.msra.mxu0 %v921_v53 }
  0x4a   :  { %923 = vmatprep.subr.bf16.mxu0 %v1057_v0 }
  0x4d   :  { %925 = vmatpush3.bf16.msra.mxu0 %v924_v61 }
  0x4e   :  { %950 = vmatprep.subr.bf16.mxu0 %v1057_v0 }
 0x103   :  { %v117_v55 = vpop.f32.mrb[0].mxu0 }
 0x104   :  { %v118_v56 = vadd.f32 %v589_v54, %v117_v55  ;;  %v696_v57 = vpop.f32.mrb[1].mxu0  ;;  %v412_v55 = vld [vmem:[#allocation4 + $0x270] sm:$0xff] }
 0x106   :  { %v121_v58 = vmax.f32 %v118_v56, 0.0  ;;  %v413_v56 = vld [vmem:[#allocation4 + $0x278] sm:$0xff] }
 0x107   :  { %v972_v57 = vpack.c.bf16 %v413_v56, %v412_v55 }
 0x108   :  { %730 = vmatmul.mubr.f32.vlgmr.msra.gmra.mrb[0].mxu1 %v121_v58  ;;  %v490_v58 = vld [vmem:[#allocation4 + $0x280] sm:$0xff] }
 0x109   :  { %799 = vmatprep.mubr.msk.f32.mxu1 %vm1058_vm0, %v1059_v1  ;;  %928 = vmatpush3.bf16.msra.mxu1 %v927_v3  ;;  %v975_v61 = vpack.c.bf16 %v491_v59, %v490_v58  ;;  %v495_v3 = vld [vmem:[#allocation4 + $0x2a8] sm:$0xff] }
 0x10a   :  { %929 = vmatprep.subr.bf16.mxu1 %v1057_v0  ;;  %v981_v4 = vpack.c.bf16 %v495_v3, %v494_v2 }
 0x10d   :  { %931 = vmatpush3.bf16.msra.mxu1 %v930_v5  ;;  %v497_v5 = vld [vmem:[#allocation4 + $0x2b8] sm:$0xff] }
 0x10e   :  { %932 = vmatprep.subr.bf16.mxu1 %v1057_v0 }
 0x111   :  { %934 = vmatpush3.bf16.msra.mxu1 %v933_v8  ;;  %v499_v8 = vld [vmem:[#allocation4 + $0x2c8] sm:$0xff] }
 0x112   :  { %935 = vmatprep.subr.bf16.mxu1 %v1057_v0  ;;  %v987_v9 = vpack.c.bf16 %v499_v8, %v498_v7 }
 0x115   :  { %937 = vmatpush3.bf16.msra.mxu1 %v936_v11  ;;  %v501_v11 = vld [vmem:[#allocation4 + $0x2d8] sm:$0xff] }
 0x116   :  { %938 = vmatprep.subr.bf16.mxu1 %v1057_v0  ;;  %v990_v12 = vpack.c.bf16 %v501_v11, %v500_v10 }
 0x119   :  { %940 = vmatpush3.bf16.msra.mxu1 %v939_v14  ;;  %v503_v14 = vld [vmem:[#allocation4 + $0x2e8] sm:$0xff] }
 0x11a   :  { %941 = vmatprep.subr.bf16.mxu1 %v1057_v0  ;;  %v993_v15 = vpack.c.bf16 %v503_v14, %v502_v13 }
 0x11d   :  { %943 = vmatpush3.bf16.msra.mxu1 %v942_v17 }
 0x11e   :  { %944 = vmatprep.subr.bf16.mxu1 %v1057_v0 }
 0x121   :  { %946 = vmatpush3.bf16.msra.mxu1 %v945_v20 }
 0x122   :  { %947 = vmatprep.subr.bf16.mxu1 %v1057_v0 }
 0x125   :  { %949 = vmatpush3.bf16.msra.mxu1 %v948_v28 }
 0x126   :  { %974 = vmatprep.subr.bf16.mxu1 %v1057_v0 }
 0x1db   :  { %v209_v22 = vpop.f32.mrb[0].mxu1 }
 0x1dc   :  { %v210_v23 = vadd.f32 %v591_v21, %v209_v22  ;;  %v731_v24 = vpop.f32.mrb[1].mxu1  ;;  %v504_v21 = vld [vmem:[#allocation4 + $0x2f0] sm:$0xff]  ;;  %v505_v22 = vld [vmem:[#allocation4 + $0x2f8] sm:$0xff] }
 0x1dd   :  { %v594_v24 = vld [vmem:[#allocation4 + $0x320] ss:$0 sm:$0xff] }
 0x1de   :  { %v213_v25 = vmax.f32 %v210_v23, 0.0  ;;  %v996_v23 = vpack.c.bf16 %v505_v22, %v504_v21 }
 0x1e0   :  { %765 = vmatmul.mubr.f32.vlgmr.msra.gmra.mrb[2].mxu0 %v213_v25 }
 0x1e1   :  { %834 = vmatprep.mubr.msk.f32.mxu0 %vm1058_vm0, %v1059_v1  ;;  %952 = vmatpush3.bf16.msra.mxu0 %v951_v32 }
 0x1e2   :  { %953 = vmatprep.subr.bf16.mxu0 %v1057_v0 }
 0x1e5   :  { %955 = vmatpush3.bf16.msra.mxu0 %v954_v34 }
 0x1e6   :  { %956 = vmatprep.subr.bf16.mxu0 %v1057_v0 }
 0x1e9   :  { %958 = vmatpush3.bf16.msra.mxu0 %v957_v37 }
 0x1ea   :  { %959 = vmatprep.subr.bf16.mxu0 %v1057_v0 }
 0x1ed   :  { %961 = vmatpush3.bf16.msra.mxu0 %v960_v40 }
 0x1ee   :  { %962 = vmatprep.subr.bf16.mxu0 %v1057_v0 }
 0x1f1   :  { %964 = vmatpush3.bf16.msra.mxu0 %v963_v43 }
 0x1f2   :  { %965 = vmatprep.subr.bf16.mxu0 %v1057_v0 }
 0x1f5   :  { %967 = vmatpush3.bf16.msra.mxu0 %v966_v46 }
 0x1f6   :  { %968 = vmatprep.subr.bf16.mxu0 %v1057_v0 }
 0x1f9   :  { %970 = vmatpush3.bf16.msra.mxu0 %v969_v49 }
 0x1fa   :  { %971 = vmatprep.subr.bf16.mxu0 %v1057_v0 }
 0x1fd   :  { %973 = vmatpush3.bf16.msra.mxu0 %v972_v57 }
 0x2b3   :  { %v301_v51 = vpop.f32.mrb[2].mxu0 }
 0x2b4   :  { %v302_v52 = vadd.f32 %v592_v50, %v301_v51  ;;  %v766_v53 = vpop.f32.mrb[3].mxu0 }
 0x2b6   :  { %v305_v54 = vmax.f32 %v302_v52, 0.0 }
 0x2b8   :  { %800 = vmatmul.mubr.f32.vlgmr.msra.gmra.mrb[2].mxu1 %v305_v54 }
 0x2b9   :  { %869 = vmatprep.mubr.msk.f32.mxu1 %vm1058_vm0, %v1059_v1  ;;  %976 = vmatpush3.bf16.msra.mxu1 %v975_v61  ;;  %v496_v1 = vld [vmem:[#allocation4 + $0x2b0] sm:$0xff] }
 0x2ba   :  { %977 = vmatprep.subr.bf16.mxu1 %v1057_v0  ;;  %v984_v6 = vpack.c.bf16 %v497_v5, %v496_v1 }
 0x2bd   :  { %979 = vmatpush3.bf16.msra.mxu1 %v978_v63 }
 0x2be   :  { %980 = vmatprep.subr.bf16.mxu1 %v1057_v0 }
 0x2c1   :  { %982 = vmatpush3.bf16.msra.mxu1 %v981_v4 }
 0x2c2   :  { %983 = vmatprep.subr.bf16.mxu1 %v1057_v0 }
 0x2c5   :  { %985 = vmatpush3.bf16.msra.mxu1 %v984_v6 }
 0x2c6   :  { %986 = vmatprep.subr.bf16.mxu1 %v1057_v0 }
 0x2c9   :  { %988 = vmatpush3.bf16.msra.mxu1 %v987_v9 }
 0x2ca   :  { %989 = vmatprep.subr.bf16.mxu1 %v1057_v0 }
 0x2cd   :  { %991 = vmatpush3.bf16.msra.mxu1 %v990_v12 }
 0x2ce   :  { %992 = vmatprep.subr.bf16.mxu1 %v1057_v0 }
 0x2d1   :  { %994 = vmatpush3.bf16.msra.mxu1 %v993_v15 }
 0x2d2   :  { %995 = vmatprep.subr.bf16.mxu1 %v1057_v0 }
 0x2d5   :  { %997 = vmatpush3.bf16.msra.mxu1 %v996_v23 }
 0x38b   :  { %v393_v17 = vpop.f32.mrb[2].mxu1 }
 0x38c   :  { %v394_v18 = vadd.f32 %v593_v16, %v393_v17  ;;  %v801_v19 = vpop.f32.mrb[3].mxu1 }
 0x38e   :  { %v397_v20 = vmax.f32 %v394_v18, 0.0 }
 0x390   :  { %835 = vmatmul.mubr.f32.vlgmr.msra.gmra.mrb[4].mxu0 %v397_v20 }
 0x463   :  { %v485_v25 = vpop.f32.mrb[4].mxu0 }
 0x464   :  { %v486_v26 = vadd.f32 %v594_v24, %v485_v25  ;;  %v836_v27 = vpop.f32.mrb[5].mxu0 }
 0x466   :  { %v489_v28 = vmax.f32 %v486_v26, 0.0 }
 0x468   :  { %870 = vmatmul.mubr.f32.vlgmr.msra.gmra.mrb[4].mxu1 %v489_v28 }
 0x53b   :  { %v577_v30 = vpop.f32.mrb[4].mxu1 }
 0x53c   :  { %v578_v0 = vadd.f32 %v595_v29, %v577_v30  ;;  %v871_v31 = vpop.f32.mrb[5].mxu1 }
 0x53e   :  { %582 = vst.msk [vmem:[%s1165_s2] sm:$0xff] %vm581_vm2, %v578_v0 }
 0x53f   :  { %587 = vsyncpa [#allocation3], 1 }
 0x540   :  { %588 = vsyncpa [#allocation5], 1 }

</bundles_post_ra>
